<compile_context>
chip_gen: v6e
topology: v6e:2x2x1
jax: 0.10.0
libtpu: 0.0.40
codegen_flags: <defaults>
</compile_context>

<pallas_src>
import jax
import jax.numpy as jnp
from jax.experimental import pallas as pl
from jax.experimental.pallas import tpu as pltpu

NEG_SLOPE = 0.01  # nn.LeakyReLU default negative_slope


def _round_up(x, m):
    return ((x + m - 1) // m) * m


def _head_kernel(ids_ref, emb_hbm, w1_ref, b1_ref, w2_ref, b2_ref,
                 out_ref, cls_buf, sem):
    """Fused CLS gather + classification head.

    ids_ref: (B,) int32 SMEM (scalar prefetch)   emb_hbm: (V, Ep) f32 in HBM
    w1_ref:  (Ep, Hp) bf16   b1_ref: (1, Hp) f32
    w2_ref:  (Hp, Cp) bf16   b2_ref: (1, Cp) f32
    out_ref: (Bp, Cp) f32    cls_buf: (Bp, Ep) f32 VMEM scratch
    sem:     (B,) DMA semaphores
    """
    B = ids_ref.shape[0]  # true batch (static)

    # ---- CLS gather: DMA one embedding row per sentence, HBM -> VMEM ----
    copies = []
    for b in range(B):  # static unrolled loop; B is tiny
        row = ids_ref[b]
        cp = pltpu.make_async_copy(
            emb_hbm.at[pl.ds(row, 1), :],   # (1, Ep) table row in HBM
            cls_buf.at[pl.ds(b, 1), :],     # (1, Ep) scratch row in VMEM
            sem.at[b])
        cp.start()
        copies.append(cp)
    for cp in copies:
        cp.wait()
    # Rows [B:Bp) of cls_buf stay uninitialized; the matmul rows they produce
    # are independent of the real rows and are sliced off in the wrapper.

    # ---- Linear E->H on the MXU: bf16 inputs, f32 accumulation ----
    cls_b = cls_buf[...].astype(jnp.bfloat16)
    h = jnp.dot(cls_b, w1_ref[...], preferred_element_type=jnp.float32)
    h = h + b1_ref[...]                      # (1, Hp) broadcast over batch, f32
    # LeakyReLU: single vmax on the VPU (f32 epilogue; v5e has no bf16 VPU).
    h = jnp.maximum(h, NEG_SLOPE * h)
    # Dropout: eval-mode identity (see TODO).
    # ---- Linear H->C on the MXU; lane-dense unmasked (Bp, Cp) store ----
    out_ref[...] = jnp.dot(h.astype(jnp.bfloat16), w2_ref[...],
                           preferred_element_type=jnp.float32) + b2_ref[...]


def classifier_head(cls_ids, prepared):
    """cls_ids: (B,) int32 CLS token ids; returns logits (B, C) f32."""
    emb = prepared["emb_table"]          # (V, Ep) f32, padded once at init
    w1, b1 = prepared["w1"], prepared["b1"]
    w2, b2 = prepared["w2"], prepared["b2"]
    B = cls_ids.shape[0]
    Ep, Hp = w1.shape
    Cp = w2.shape[1]
    Bp = _round_up(B, 8)                 # f32 sublane packing

    out_p = pl.pallas_call(
        _head_kernel,
        out_shape=jax.ShapeDtypeStruct((Bp, Cp), jnp.float32),
        grid_spec=pltpu.PrefetchScalarGridSpec(
            num_scalar_prefetch=1,       # cls_ids -> SMEM, fed to the kernel
            grid=(1,),
            in_specs=[
                pl.BlockSpec(memory_space=pl.ANY),                # emb table (HBM)
                pl.BlockSpec((Ep, Hp), lambda i, ids: (0, 0)),    # w1 bf16
                pl.BlockSpec((1, Hp), lambda i, ids: (0, 0)),     # b1 f32
                pl.BlockSpec((Hp, Cp), lambda i, ids: (0, 0)),    # w2 bf16
                pl.BlockSpec((1, Cp), lambda i, ids: (0, 0)),     # b2 f32
            ],
            out_specs=pl.BlockSpec((Bp, Cp), lambda i, ids: (0, 0)),
            scratch_shapes=[
                pltpu.VMEM((Bp, Ep), jnp.float32),                # gathered CLS rows
                pltpu.SemaphoreType.DMA((B,)),
            ],
        ),
        compiler_params=pltpu.CompilerParams(
            dimension_semantics=("arbitrary",)),
    )(cls_ids, emb, w1, b1, w2, b2)

    # Slice padding back off (batch rows and class columns).
    return out_p[:B, :prepared["n_classes"]]


def forward(input_ids, attention_mask, prepared):
    """Reproduces SentenceTransformerAndClassifier.forward semantics."""
    # attention_mask is consumed by the (synthetic) encoder only.
    del attention_mask
    # Only the CLS token feeds the head; pass its id and let the kernel gather
    # the embedding row straight from HBM.
    cls_ids = input_ids[:, 0].astype(jnp.int32)                  # (B,)
    return classifier_head(cls_ids, prepared)                    # (B, C)


# ----------------------------- parameter prep -----------------------------

def init_params(key, vocab_size, embedding_dim, hidden_dim, n_classes):
    """Raw f32 parameters (PyTorch-like), deterministic."""
    k_emb, k_w1, k_b1, k_w2, k_b2 = jax.random.split(key, 5)
    lim1 = 1.0 / jnp.sqrt(embedding_dim)
    lim2 = 1.0 / jnp.sqrt(hidden_dim)
    return {
        "emb_table": jax.random.normal(k_emb, (vocab_size, embedding_dim),
                                       jnp.float32) * 0.02,
        "w1": jax.random.uniform(k_w1, (embedding_dim, hidden_dim),
                                 jnp.float32, -lim1, lim1),
        "b1": jax.random.uniform(k_b1, (1, hidden_dim),
                                 jnp.float32, -lim1, lim1),
        "w2": jax.random.uniform(k_w2, (hidden_dim, n_classes),
                                 jnp.float32, -lim2, lim2),
        "b2": jax.random.uniform(k_b2, (1, n_classes),
                                 jnp.float32, -lim2, lim2),
    }


def prepare_params(params):
    """One-time padding + bf16 casts of batch-independent constants (hoisted
    out of the per-step path)."""
    E, H = params["w1"].shape
    C = params["w2"].shape[1]
    Ep = _round_up(E, 128)
    Hp = _round_up(H, 128)
    Cp = _round_up(C, 128)

    emb = params["emb_table"].astype(jnp.float32)
    if Ep != E:
        emb = jnp.zeros((emb.shape[0], Ep), jnp.float32).at[:, :E].set(emb)
    w1_p = jnp.zeros((Ep, Hp), jnp.bfloat16).at[:E, :H].set(
        params["w1"].astype(jnp.bfloat16))
    b1_p = jnp.zeros((1, Hp), jnp.float32).at[:, :H].set(params["b1"])
    w2_p = jnp.zeros((Hp, Cp), jnp.bfloat16).at[:H, :C].set(
        params["w2"].astype(jnp.bfloat16))
    b2_p = jnp.zeros((1, Cp), jnp.float32).at[:, :C].set(params["b2"])

    return {"emb_table": emb, "w1": w1_p, "b1": b1_p, "w2": w2_p, "b2": b2_p,
            "n_classes": C}


# ------------------------------- references -------------------------------

def forward_ref_bf16(input_ids, attention_mask, params):
    """Pure-JAX reference using the same bf16-matmul / f32-accumulate path."""
    del attention_mask
    cls = params["emb_table"][input_ids[:, 0]]
    cls_b = cls.astype(jnp.bfloat16)
    w1_b = params["w1"].astype(jnp.bfloat16)
    w2_b = params["w2"].astype(jnp.bfloat16)
    h = jnp.dot(cls_b, w1_b, preferred_element_type=jnp.float32) + params["b1"][0]
    h = jnp.maximum(h, NEG_SLOPE * h)
    return (jnp.dot(h.astype(jnp.bfloat16), w2_b,
                    preferred_element_type=jnp.float32) + params["b2"][0])


def forward_ref_f32(input_ids, attention_mask, params):
    """Full-f32 reference matching PyTorch nn.Linear semantics."""
    del attention_mask
    cls = params["emb_table"][input_ids[:, 0]]
    h = cls @ params["w1"] + params["b1"][0]
    h = jnp.maximum(h, NEG_SLOPE * h)
    return h @ params["w2"] + params["b2"][0]


# ---------------------------------- main ----------------------------------

if __name__ == "__main__":
    # Small shapes consistent with the module (embedding/hidden dims scaled down).
    B, S = 2, 8
    VOCAB = 1000
    EMBEDDING_DIM = 128
    HIDDEN_DIM = 64
    N_CLASSES = 4

    key = jax.random.PRNGKey(0)
    k_params, k_ids = jax.random.split(key)
    params = init_params(k_params, VOCAB, EMBEDDING_DIM, HIDDEN_DIM, N_CLASSES)
    prepared = prepare_params(params)   # one-time weight prep (hoisted)

    input_ids = jax.random.randint(k_ids, (B, S), 0, VOCAB, dtype=jnp.int32)
    attention_mask = jnp.ones((B, S), dtype=jnp.int32)

    logits = forward(input_ids, attention_mask, prepared)
    logits = jax.block_until_ready(logits)

    ref_bf16 = forward_ref_bf16(input_ids, attention_mask, params)
    ref_f32 = forward_ref_f32(input_ids, attention_mask, params)

    assert logits.shape == (B, N_CLASSES)
    assert jnp.allclose(logits, ref_bf16, atol=1e-2, rtol=1e-2), \
        "mismatch vs bf16-path reference"
    assert jnp.allclose(logits, ref_f32, atol=2e-2, rtol=2e-2), \
        "mismatch vs f32 (PyTorch-semantics) reference"

    print("KERNEL_OK")
</pallas_src>

<mosaic_0001>
module attributes {stable_mosaic.version = 11 : i64} {
  func.func @_head_kernel(%arg0: i32, %arg1: memref<2xi32, #tpu.memory_space<smem>>, %arg2: memref<1000x128xf32, #tpu.memory_space<any>>, %arg3: memref<128x128xbf16, #tpu.memory_space<vmem>>, %arg4: memref<1x128xf32, #tpu.memory_space<vmem>>, %arg5: memref<128x128xbf16, #tpu.memory_space<vmem>>, %arg6: memref<1x128xf32, #tpu.memory_space<vmem>>, %arg7: memref<8x128xf32, #tpu.memory_space<vmem>>, %arg8: memref<8x128xf32, #tpu.memory_space<vmem>>, %arg9: memref<2x!tpu.dma_semaphore, #tpu.memory_space<semaphore_mem>>) attributes {dimension_semantics = [#tpu.dimension_semantics<arbitrary>], iteration_bounds = array<i64: 1>, scalar_prefetch = 1 : i64, scratch_operands = 2 : i64, tpu.core_type = #tpu.core_type<tc>, window_params = [{}, {pipeline_mode = #tpu.pipeline_mode<synchronous>, transform_indices = @transform_1, window_bounds = array<i64: 128, 128>}, {pipeline_mode = #tpu.pipeline_mode<synchronous>, transform_indices = @transform_2, window_bounds = array<i64: 1, 128>}, {pipeline_mode = #tpu.pipeline_mode<synchronous>, transform_indices = @transform_3, window_bounds = array<i64: 128, 128>}, {pipeline_mode = #tpu.pipeline_mode<synchronous>, transform_indices = @transform_4, window_bounds = array<i64: 1, 128>}, {pipeline_mode = #tpu.pipeline_mode<synchronous>, transform_indices = @transform_5, window_bounds = array<i64: 8, 128>}]} {
    %c0 = arith.constant 0 : index
    %0 = memref.load %arg1[%c0] : memref<2xi32, #tpu.memory_space<smem>>
    %c0_i32 = arith.constant 0 : i32
    %c0_i32_0 = arith.constant 0 : i32
    %1 = tpu.memref_slice %arg2[%0, %c0_i32_0] : memref<1000x128xf32, #tpu.memory_space<any>> -> memref<1x128xf32, #tpu.memory_space<any>>
    %c0_i32_1 = arith.constant 0 : i32
    %c0_i32_2 = arith.constant 0 : i32
    %2 = tpu.memref_slice %arg8[%c0_i32_1, %c0_i32_2] : memref<8x128xf32, #tpu.memory_space<vmem>> -> memref<1x128xf32, #tpu.memory_space<vmem>>
    %3 = tpu.memref_slice %arg9[%c0_i32] : memref<2x!tpu.dma_semaphore, #tpu.memory_space<semaphore_mem>> -> memref<1x!tpu.dma_semaphore, #tpu.memory_space<semaphore_mem>>
    %4 = tpu.memref_squeeze %3 : memref<1x!tpu.dma_semaphore, #tpu.memory_space<semaphore_mem>> -> memref<!tpu.dma_semaphore, #tpu.memory_space<semaphore_mem>>
    tpu.enqueue_dma source(%1 : memref<1x128xf32, #tpu.memory_space<any>>) target(%2 : memref<1x128xf32, #tpu.memory_space<vmem>>) target_semaphore(%4 : memref<!tpu.dma_semaphore, #tpu.memory_space<semaphore_mem>>)
    %c1 = arith.constant 1 : index
    %5 = memref.load %arg1[%c1] : memref<2xi32, #tpu.memory_space<smem>>
    %c1_i32 = arith.constant 1 : i32
    %c0_i32_3 = arith.constant 0 : i32
    %6 = tpu.memref_slice %arg2[%5, %c0_i32_3] : memref<1000x128xf32, #tpu.memory_space<any>> -> memref<1x128xf32, #tpu.memory_space<any>>
    %c1_i32_4 = arith.constant 1 : i32
    %c0_i32_5 = arith.constant 0 : i32
    %7 = tpu.memref_slice %arg8[%c1_i32_4, %c0_i32_5] : memref<8x128xf32, #tpu.memory_space<vmem>> -> memref<1x128xf32, #tpu.memory_space<vmem>>
    %8 = tpu.memref_slice %arg9[%c1_i32] : memref<2x!tpu.dma_semaphore, #tpu.memory_space<semaphore_mem>> -> memref<1x!tpu.dma_semaphore, #tpu.memory_space<semaphore_mem>>
    %9 = tpu.memref_squeeze %8 : memref<1x!tpu.dma_semaphore, #tpu.memory_space<semaphore_mem>> -> memref<!tpu.dma_semaphore, #tpu.memory_space<semaphore_mem>>
    tpu.enqueue_dma source(%6 : memref<1x128xf32, #tpu.memory_space<any>>) target(%7 : memref<1x128xf32, #tpu.memory_space<vmem>>) target_semaphore(%9 : memref<!tpu.dma_semaphore, #tpu.memory_space<semaphore_mem>>)
    %c0_i32_6 = arith.constant 0 : i32
    %c0_i32_7 = arith.constant 0 : i32
    %10 = tpu.memref_slice %arg2[%0, %c0_i32_7] : memref<1000x128xf32, #tpu.memory_space<any>> -> memref<1x128xf32, #tpu.memory_space<any>>
    %c0_i32_8 = arith.constant 0 : i32
    %c0_i32_9 = arith.constant 0 : i32
    %11 = tpu.memref_slice %arg8[%c0_i32_8, %c0_i32_9] : memref<8x128xf32, #tpu.memory_space<vmem>> -> memref<1x128xf32, #tpu.memory_space<vmem>>
    %12 = tpu.memref_slice %arg9[%c0_i32_6] : memref<2x!tpu.dma_semaphore, #tpu.memory_space<semaphore_mem>> -> memref<1x!tpu.dma_semaphore, #tpu.memory_space<semaphore_mem>>
    %13 = tpu.memref_squeeze %12 : memref<1x!tpu.dma_semaphore, #tpu.memory_space<semaphore_mem>> -> memref<!tpu.dma_semaphore, #tpu.memory_space<semaphore_mem>>
    tpu.wait_dma2 semaphore(%13 : memref<!tpu.dma_semaphore, #tpu.memory_space<semaphore_mem>>) src(%10 : memref<1x128xf32, #tpu.memory_space<any>>) dst(%11 : memref<1x128xf32, #tpu.memory_space<vmem>>)
    %c1_i32_10 = arith.constant 1 : i32
    %c0_i32_11 = arith.constant 0 : i32
    %14 = tpu.memref_slice %arg2[%5, %c0_i32_11] : memref<1000x128xf32, #tpu.memory_space<any>> -> memref<1x128xf32, #tpu.memory_space<any>>
    %c1_i32_12 = arith.constant 1 : i32
    %c0_i32_13 = arith.constant 0 : i32
    %15 = tpu.memref_slice %arg8[%c1_i32_12, %c0_i32_13] : memref<8x128xf32, #tpu.memory_space<vmem>> -> memref<1x128xf32, #tpu.memory_space<vmem>>
    %16 = tpu.memref_slice %arg9[%c1_i32_10] : memref<2x!tpu.dma_semaphore, #tpu.memory_space<semaphore_mem>> -> memref<1x!tpu.dma_semaphore, #tpu.memory_space<semaphore_mem>>
    %17 = tpu.memref_squeeze %16 : memref<1x!tpu.dma_semaphore, #tpu.memory_space<semaphore_mem>> -> memref<!tpu.dma_semaphore, #tpu.memory_space<semaphore_mem>>
    tpu.wait_dma2 semaphore(%17 : memref<!tpu.dma_semaphore, #tpu.memory_space<semaphore_mem>>) src(%14 : memref<1x128xf32, #tpu.memory_space<any>>) dst(%15 : memref<1x128xf32, #tpu.memory_space<vmem>>)
    %c0_14 = arith.constant 0 : index
    %c0_15 = arith.constant 0 : index
    %18 = vector.load %arg8[%c0_14, %c0_15] : memref<8x128xf32, #tpu.memory_space<vmem>>, vector<8x128xf32>
    %19 = arith.truncf %18 : vector<8x128xf32> to vector<8x128xbf16>
    %c0_16 = arith.constant 0 : index
    %c0_17 = arith.constant 0 : index
    %20 = vector.load %arg3[%c0_16, %c0_17] : memref<128x128xbf16, #tpu.memory_space<vmem>>, vector<128x128xbf16>
    %cst = arith.constant dense<0.000000e+00> : vector<8x128xf32>
    %21 = tpu.matmul %19, %20, %cst {dimension_numbers = #tpu.dot_dimension_numbers<[1], [0], [0], [1], [0, 0, 1, 1], [], []>} : vector<8x128xbf16>, vector<128x128xbf16>, vector<8x128xf32> -> vector<8x128xf32>
    %c0_18 = arith.constant 0 : index
    %c0_19 = arith.constant 0 : index
    %22 = vector.load %arg4[%c0_18, %c0_19] : memref<1x128xf32, #tpu.memory_space<vmem>>, vector<1x128xf32>
    %23 = vector.broadcast %22 : vector<1x128xf32> to vector<8x128xf32>
    %24 = arith.addf %21, %23 : vector<8x128xf32>
    %cst_20 = arith.constant 0.00999999977 : f32
    %25 = vector.broadcast %cst_20 : f32 to vector<8x128xf32>
    %26 = arith.mulf %25, %24 : vector<8x128xf32>
    %27 = arith.maximumf %24, %26 : vector<8x128xf32>
    %28 = arith.truncf %27 : vector<8x128xf32> to vector<8x128xbf16>
    %c0_21 = arith.constant 0 : index
    %c0_22 = arith.constant 0 : index
    %29 = vector.load %arg5[%c0_21, %c0_22] : memref<128x128xbf16, #tpu.memory_space<vmem>>, vector<128x128xbf16>
    %cst_23 = arith.constant dense<0.000000e+00> : vector<8x128xf32>
    %30 = tpu.matmul %28, %29, %cst_23 {dimension_numbers = #tpu.dot_dimension_numbers<[1], [0], [0], [1], [0, 0, 1, 1], [], []>} : vector<8x128xbf16>, vector<128x128xbf16>, vector<8x128xf32> -> vector<8x128xf32>
    %c0_24 = arith.constant 0 : index
    %c0_25 = arith.constant 0 : index
    %31 = vector.load %arg6[%c0_24, %c0_25] : memref<1x128xf32, #tpu.memory_space<vmem>>, vector<1x128xf32>
    %32 = vector.broadcast %31 : vector<1x128xf32> to vector<8x128xf32>
    %33 = arith.addf %30, %32 : vector<8x128xf32>
    %c0_26 = arith.constant 0 : index
    %c0_27 = arith.constant 0 : index
    %34 = vector.load %arg7[%c0_26, %c0_27] : memref<8x128xf32, #tpu.memory_space<vmem>>, vector<8x128xf32>
    tpu.vector_store %arg7[%c0_26, %c0_27], %33 {strides = array<i32>} : memref<8x128xf32, #tpu.memory_space<vmem>>, vector<8x128xf32>,
    return
  }
  func.func @transform_1(%arg0: i32, %arg1: memref<2xi32, #tpu.memory_space<smem>>) -> (i32, i32) {
    %c0_i32 = arith.constant 0 : i32
    %c0_i32_0 = arith.constant 0 : i32
    %c0_i32_1 = arith.constant 0 : i32
    return %c0_i32, %c0_i32_0 : i32, i32
  }
  func.func @transform_2(%arg0: i32, %arg1: memref<2xi32, #tpu.memory_space<smem>>) -> (i32, i32) {
    %c0_i32 = arith.constant 0 : i32
    %c0_i32_0 = arith.constant 0 : i32
    %c0_i32_1 = arith.constant 0 : i32
    return %c0_i32, %c0_i32_0 : i32, i32
  }
  func.func @transform_3(%arg0: i32, %arg1: memref<2xi32, #tpu.memory_space<smem>>) -> (i32, i32) {
    %c0_i32 = arith.constant 0 : i32
    %c0_i32_0 = arith.constant 0 : i32
    %c0_i32_1 = arith.constant 0 : i32
    return %c0_i32, %c0_i32_0 : i32, i32
  }
  func.func @transform_4(%arg0: i32, %arg1: memref<2xi32, #tpu.memory_space<smem>>) -> (i32, i32) {
    %c0_i32 = arith.constant 0 : i32
    %c0_i32_0 = arith.constant 0 : i32
    %c0_i32_1 = arith.constant 0 : i32
    return %c0_i32, %c0_i32_0 : i32, i32
  }
  func.func @transform_5(%arg0: i32, %arg1: memref<2xi32, #tpu.memory_space<smem>>) -> (i32, i32) {
    %c0_i32 = arith.constant 0 : i32
    %c0_i32_0 = arith.constant 0 : i32
    %c0_i32_1 = arith.constant 0 : i32
    return %c0_i32, %c0_i32_0 : i32, i32
  }
}

</mosaic_0001>

<bundles_post_ra>
// kernel: tpu_custom_call.1
= control target key start
LH: loop header
LB: loop body
LE: loop exit
PB: predicated region body
PF: predicated region fallthrough
CT: control target
= control target key end

     0   :  { %s580_s21 = smov [#allocation5]   ;;  %s679_s0 = inlined_call_operand.hbm [shape: s32[2], index: 0, kind: input, shape index: {}]   ;;  %s680_s1 = inlined_call_operand.hbm [shape: f32[1000,128], index: 1, kind: input, shape index: {}]   ;;  %s681_s2 = inlined_call_operand.hbm [shape: bf16[128,128], index: 2, kind: input, shape index: {}]   ;;  %s682_s3 = inlined_call_operand.vmem [shape: f32[1,128], index: 3, kind: input, shape index: {}]   ;;  %s683_s4 = inlined_call_operand.hbm [shape: bf16[128,128], index: 4, kind: input, shape index: {}]   ;;  %s684_s5 = inlined_call_operand.vmem [shape: f32[1,128], index: 5, kind: input, shape index: {}]   ;;  %s685_s6 = inlined_call_operand.hbm [shape: f32[8,128], index: 6, kind: output, shape index: {}]  }
   0x1   :  { %12 = dma.hbm_to_smem %s679_s0, 16, %s580_s21, [#allocation4] }
   0x2   :  { %568 = dma.done.wait [#allocation4], 16 }
   0x3   :  { %569 = vsyncadd [#allocation4], 4294967280 }
   0x4   :  { %14 = sfence }
   0x5   :  { %15 = vsyncpa [#allocation7], 0 }
   0x6   :  { %16 = vsyncpa [#allocation10], 0 }
   0x7   :  { %17 = vsyncpa [#allocation8], 0  ;;  %s581_s24 = smov [#allocation6]  }
   0x8   :  { %s23_s25 = sshll.u32 %s581_s24, 4  ;;  %s24_s25 = int_to_ptr.vmem [resolvable:$true] %s23_s25 }
   0x9   :  { %s472_s26 = scalar_lea.vmem %s24_s25, 1024  ;;  %p477_p1 = scmp.lt.s32.totalorder %s24_s25, %s24_s25 }
   0xa   :  { %p473_p0 = scmp.ne.s32.totalorder %s24_s25, %s472_s26  ;;  %p478_p2 = scmp.lt.s32.totalorder %s472_s26, %s472_s26 }
   0xc   :  { %p479_p3 = por %p478_p2, %p477_p1 }
   0xe   :  { %p480_p4 = pnand %p479_p3, %p473_p0 }
  0x10   :  { %483 = shalt.err (!%p480_p4)
}
  0x11   :  { %s582_s27 = smov 64   ;;  %s583_s28 = smov 4  }
  0x12   :  { %29 = dma.hbm_to_vmem [thread:$0]  %s681_s2, 1024, %s24_s25, [#allocation7], %s582_s27, %s582_s27, %s583_s28  }
  0x13   :  { %s584_s30 = smov [#allocation9]  }
  0x14   :  { %s37_s7 = sshll.u32 %s584_s30, 4  ;;  %s38_s7 = int_to_ptr.vmem [resolvable:$true] %s37_s7 }
  0x15   :  { %s492_s8 = scalar_lea.vmem %s38_s7, 1024  ;;  %p497_p6 = scmp.lt.s32.totalorder %s38_s7, %s38_s7 }
  0x16   :  { %p493_p5 = scmp.ne.s32.totalorder %s38_s7, %s492_s8  ;;  %p498_p7 = scmp.lt.s32.totalorder %s492_s8, %s492_s8 }
  0x18   :  { %p499_p8 = por %p498_p7, %p497_p6 }
  0x1a   :  { %p500_p9 = pnand %p499_p8, %p493_p5 }
  0x1c   :  { %503 = shalt.err (!%p500_p9)
}
  0x1d   :  { %43 = dma.hbm_to_vmem [thread:$0]  %s683_s4, 1024, %s38_s7, [#allocation10], %s582_s27, %s582_s27, %s583_s28  }
  0x1e   :  { %570 = dma.done.wait [#allocation7], 1024  }
  0x1f   :  { %571 = vsyncadd [#allocation7], 4294966272 }
  0x20   :  { %572 = dma.done.wait [#allocation10], 1024  }
  0x21   :  { %573 = vsyncadd [#allocation10], 4294966272  ;;  %s350_s11 = sld [smem:[#allocation5 + $0x1]]  ;;  %s585_s12 = smov [#allocation2]  }
  0x22   :  { %s53_s2 = sld [smem:[#allocation5]]  ;;  %s63_s13 = sshll.u32 %s585_s12, 4  ;;  %s634_s13 = int_to_ptr.vmem [resolvable:$true] %s63_s13 }
  0x23   :  { %s586_s14 = smov [#allocation2 + $0x1]   ;;  %s506_s26 = scalar_lea.hbm %s680_s1, 16000 }
  0x24   :  { %s79_s15 = sshll.u32 %s586_s14, 4  ;;  %s636_s15 = int_to_ptr.vmem [resolvable:$true] %s79_s15 }
  0x27   :  { %s351_s16 = sshll.u32 %s350_s11, 4 }
  0x28   :  { %s349_s17 = sshll.u32 %s53_s2, 4  ;;  %s641_s4 = scalar_lea.hbm %s680_s1, %s351_s16 }
  0x29   :  { %s55_s22 = scalar_lea.hbm %s680_s1, %s349_s17 }
  0x2a   :  { %s504_s23 = scalar_lea.hbm %s55_s22, 16  ;;  %p507_p11 = scmp.lt.s32.totalorder %s55_s22, %s680_s1 }
  0x2b   :  { %p505_p10 = scmp.ne.s32.totalorder %s55_s22, %s504_s23  ;;  %p508_p12 = scmp.lt.s32.totalorder %s506_s26, %s504_s23 }
  0x2d   :  { %p509_p13 = por %p508_p12, %p507_p11 }
  0x2f   :  { %p510_p0 = pnand %p509_p13, %p505_p10 }
  0x31   :  { %513 = shalt.err (!%p510_p0)  }
  0x32   :  { %s514_s29 = scalar_lea.vmem %s634_s13, 16  ;;  %s518_s0 = scalar_lea.vmem %s634_s13, 128 }
  0x33   :  { %p515_p1 = scmp.ne.s32.totalorder %s634_s13, %s514_s29  ;;  %p519_p2 = scmp.lt.s32.totalorder %s634_s13, %s634_s13 }
  0x34   :  { %p520_p3 = scmp.lt.s32.totalorder %s518_s0, %s514_s29 }
  0x36   :  { %p521_p4 = por %p520_p3, %p519_p2 }
  0x38   :  { %p522_p5 = pnand %p521_p4, %p515_p1 }
  0x3a   :  { %525 = shalt.err (!%p522_p5)  }
  0x3b   :  { %66 = dma.hbm_to_vmem [thread:$0]  %s55_s22, 16, %s634_s13, [#allocation3] }
  0x3c   :  { %s526_s30 = scalar_lea.hbm %s641_s4, 16  ;;  %p529_p7 = scmp.lt.s32.totalorder %s641_s4, %s680_s1 }
  0x3d   :  { %p527_p6 = scmp.ne.s32.totalorder %s641_s4, %s526_s30  ;;  %p530_p8 = scmp.lt.s32.totalorder %s506_s26, %s526_s30 }
  0x3f   :  { %p531_p9 = por %p530_p8, %p529_p7 }
  0x41   :  { %p532_p10 = pnand %p531_p9, %p527_p6 }
  0x43   :  { %535 = shalt.err (!%p532_p10)  }
  0x44   :  { %s536_s9 = scalar_lea.vmem %s636_s15, 16  ;;  %p541_p12 = scmp.lt.s32.totalorder %s636_s15, %s634_s13 }
  0x45   :  { %p537_p11 = scmp.ne.s32.totalorder %s636_s15, %s536_s9  ;;  %p542_p13 = scmp.lt.s32.totalorder %s518_s0, %s536_s9 }
  0x47   :  { %p543_p0 = por %p542_p13, %p541_p12 }
  0x49   :  { %p544_p1 = pnand %p543_p0, %p537_p11 }
  0x4b   :  { %547 = shalt.err (!%p544_p1)  }
  0x4c   :  { %82 = dma.hbm_to_vmem [thread:$0]  %s641_s4, 16, %s636_s15, [#allocation3 + $0x1] }
  0x4d   :  { %574 = dma.done.wait [#allocation3], 16 }
  0x4e   :  { %575 = vsyncadd [#allocation3], 4294967280 }
  0x4f   :  { %576 = dma.done.wait [#allocation3 + $0x1], 16 }
  0x50   :  { %577 = vsyncadd [#allocation3 + $0x1], 4294967280  ;;  %v587_v0 = vmov 0.0   ;;  %vm588_vm0 = vmmov 0   ;;  %v440_v1 = vld [vmem:[#allocation6 + $0x38] sm:$0xff]   ;;  %v441_v2 = vld [vmem:[#allocation6 + $0x30] sm:$0xff]  }
  0x51   :  { %390 = vmatprep.subr.bf16.mxu0 %v587_v0  ;;  %406 = vmatprep.mubr.msk.bf16.mxu0 %vm588_vm0, %v587_v0  ;;  %v442_v3 = vld [vmem:[#allocation6 + $0x28] sm:$0xff]   ;;  %v448_v4 = vld [vmem:[#allocation9 + $0x38] sm:$0xff]   ;;  %v443_v5 = vld [vmem:[#allocation6 + $0x20] sm:$0xff]   ;;  %s589_s12 = smov [#allocation11]  }
  0x52   :  { %410 = vmatprep.subr.bf16.mxu1 %v587_v0  ;;  %426 = vmatprep.mubr.msk.bf16.mxu1 %vm588_vm0, %v587_v0  ;;  %v449_v6 = vld [vmem:[#allocation9 + $0x30] sm:$0xff]   ;;  %v444_v7 = vld [vmem:[#allocation6 + $0x18] sm:$0xff]   ;;  %v450_v8 = vld [vmem:[#allocation9 + $0x28] sm:$0xff]   ;;  %s322_s13 = sshll.u32 %s589_s12, 4  ;;  %s323_s13 = int_to_ptr.vmem [resolvable:$true] %s322_s13 }
  0x53   :  { %391 = vmatpush3.bf16.msra.mxu0 %v440_v1  ;;  %411 = vmatpush3.bf16.msra.mxu1 %v448_v4  ;;  %v445_v9 = vld [vmem:[#allocation6 + $0x10] sm:$0xff]   ;;  %v451_v10 = vld [vmem:[#allocation9 + $0x20] sm:$0xff]   ;;  %v446_v11 = vld [vmem:[#allocation6 + $0x8] sm:$0xff]   ;;  %p553_p3 = scmp.lt.s32.totalorder %s323_s13, %s323_s13 }
  0x54   :  { %392 = vmatprep.subr.bf16.mxu0 %v587_v0  ;;  %412 = vmatprep.subr.bf16.mxu1 %v587_v0  ;;  %v452_v12 = vld [vmem:[#allocation9 + $0x18] sm:$0xff]   ;;  %v447_v13 = vld [vmem:[#allocation6] sm:$0xff]   ;;  %v453_v15 = vld [vmem:[#allocation9 + $0x10] sm:$0xff]  }
  0x55   :  { %v88_v14 = vld [vmem:[#allocation2] sm:$0xff]  ;;  %v454_v17 = vld [vmem:[#allocation9 + $0x8] sm:$0xff]   ;;  %v455_v18 = vld [vmem:[#allocation9] sm:$0xff]  }
  0x56   :  { %v89_v16 = vpack.c.bf16 %v88_v14, %v88_v14  ;;  %v352_v19 = vld [vmem:[%s682_s3] ss:$0 sm:$0xff]  ;;  %s548_s3 = scalar_lea.vmem %s323_s13, 128 }
  0x57   :  { %393 = vmatpush3.bf16.msra.mxu0 %v441_v2  ;;  %413 = vmatpush3.bf16.msra.mxu1 %v449_v6  ;;  %v361_v28 = vld [vmem:[%s684_s5] ss:$0 sm:$0xff]  ;;  %p549_p2 = scmp.ne.s32.totalorder %s323_s13, %s548_s3  ;;  %p554_p4 = scmp.lt.s32.totalorder %s548_s3, %s548_s3 }
  0x58   :  { %394 = vmatprep.subr.bf16.mxu0 %v587_v0  ;;  %414 = vmatprep.subr.bf16.mxu1 %v587_v0 }
  0x59   :  { %p555_p5 = por %p554_p4, %p553_p3 }
  0x5b   :  { %395 = vmatpush3.bf16.msra.mxu0 %v442_v3  ;;  %415 = vmatpush3.bf16.msra.mxu1 %v450_v8  ;;  %p556_p6 = pnand %p555_p5, %p549_p2 }
  0x5c   :  { %396 = vmatprep.subr.bf16.mxu0 %v587_v0  ;;  %416 = vmatprep.subr.bf16.mxu1 %v587_v0 }
  0x5f   :  { %397 = vmatpush3.bf16.msra.mxu0 %v443_v5  ;;  %417 = vmatpush3.bf16.msra.mxu1 %v451_v10 }
  0x60   :  { %398 = vmatprep.subr.bf16.mxu0 %v587_v0  ;;  %418 = vmatprep.subr.bf16.mxu1 %v587_v0 }
  0x63   :  { %399 = vmatpush3.bf16.msra.mxu0 %v444_v7  ;;  %419 = vmatpush3.bf16.msra.mxu1 %v452_v12 }
  0x64   :  { %400 = vmatprep.subr.bf16.mxu0 %v587_v0  ;;  %420 = vmatprep.subr.bf16.mxu1 %v587_v0 }
  0x67   :  { %401 = vmatpush3.bf16.msra.mxu0 %v445_v9  ;;  %421 = vmatpush3.bf16.msra.mxu1 %v453_v15 }
  0x68   :  { %402 = vmatprep.subr.bf16.mxu0 %v587_v0  ;;  %422 = vmatprep.subr.bf16.mxu1 %v587_v0 }
  0x6b   :  { %403 = vmatpush3.bf16.msra.mxu0 %v446_v11  ;;  %423 = vmatpush3.bf16.msra.mxu1 %v454_v17 }
  0x6c   :  { %404 = vmatprep.subr.bf16.mxu0 %v587_v0  ;;  %424 = vmatprep.subr.bf16.mxu1 %v587_v0 }
  0x6f   :  { %405 = vmatpush3.bf16.msra.mxu0 %v447_v13  ;;  %425 = vmatpush3.bf16.msra.mxu1 %v455_v18 }
  0x72   :  { %407 = vmatmul.mubr.bf16.vlgmr.msra.gmra.mxu0 %v89_v16 }
 0x132   :  { %v195_v20 = vpop.f32.mrf.mxu0 }
 0x133   :  { %v196_v21 = vadd.f32 %v352_v19, %v195_v20 }
 0x134   :  { %v408_v22 = vpop.f32.mrf.mxu0 }
 0x135   :  { %v201_v23 = vmul.f32 0.01, %v196_v21 }
 0x136   :  { %v198_v24 = vpop.f32.mrf.mxu0 }
 0x137   :  { %v202_v25 = vmax.f32 %v196_v21, %v201_v23 }
 0x138   :  { %v409_v26 = vpop.f32.mrf.mxu0 }
 0x139   :  { %v203_v27 = vpack.c.bf16 %v202_v25, %v202_v25 }
 0x13b   :  { %427 = vmatmul.mubr.bf16.vlgmr.msra.gmra.mxu1 %v203_v27 }
 0x1fb   :  { %v309_v29 = vpop.f32.mrf.mxu1 }
 0x1fc   :  { %v310_v30 = vadd.f32 %v361_v28, %v309_v29 }
 0x1fd   :  { %v428_v31 = vpop.f32.mrf.mxu1 }
 0x1fe   :  { %315 = vst [vmem:[#allocation11] sm:$0xff] %v310_v30 }
 0x1ff   :  { %v312_v32 = vpop.f32.mrf.mxu1 }
 0x200   :  { %559 = shalt.err (!%p556_p6)
}
 0x201   :  { %325 = dma.vmem_to_hbm [thread:$0]  %s323_s13, 128, %s685_s6, [#allocation8]   ;;  %v429_v33 = vpop.f32.mrf.mxu1 }
 0x202   :  { %578 = dma.done.wait [#allocation8], 128  }
 0x203   :  { %579 = vsyncadd [#allocation8], 4294967168 }
 0x204   :  { %329 = vsyncpa [#allocation7], 1 }
 0x205   :  { %330 = vsyncpa [#allocation10], 1 }
 0x206   :  { %331 = vsyncpa [#allocation8], 1 }
 0x207   :  { %332 = vsyncmov [#allocation3] }
 0x20a   :  { %s333_s5 = vpop.sfrf %332 }
 0x20b   :  { %p370_p7 = scmp.ne.s32.totalorder %s333_s5, 0 }
 0x20d   :  { %337 = shalt.err (%p370_p7)  }
 0x20e   :  { %339 = vsyncmov [#allocation3 + $0x1] }
 0x211   :  { %s340_s16 = vpop.sfrf %339 }
 0x212   :  { %p371_p8 = scmp.ne.s32.totalorder %s340_s16, 0 }
 0x214   :  { %344 = shalt.err (%p371_p8)  }

</bundles_post_ra>
